<compile_context>
chip_gen: v7x
topology: tpu7x:2x2x1
jax: 0.10.0
libtpu: 0.0.40
codegen_flags: <defaults>
</compile_context>

<pallas_src>
import math

import jax
import jax.numpy as jnp
from jax import lax
from jax.experimental import pallas as pl
from jax.experimental.pallas import tpu as pltpu

_LOG2 = math.log(2.0)


def _round_up(x: int, m: int) -> int:
    return ((x + m - 1) // m) * m


def _make_kernel(temperature: float, batch: int, tm: int, b_pad: int):
    inv_temp = 1.0 / float(temperature)

    def kernel(img_all_ref, txt_all_ref, out_ref):
        i = pl.program_id(0)
        row0 = i * tm
        row_start = pl.multiple_of(row0, 8)  # tm is a multiple of 8 -> aligned sublanes

        # Row blocks are sliced from the resident arrays (no duplicated HBM traffic).
        img_blk = img_all_ref[pl.ds(row_start, tm), :]
        txt_blk = txt_all_ref[pl.ds(row_start, tm), :]

        scale = jnp.float32(inv_temp)
        dn = (((1,), (1,)), ((), ()))  # contract last dim of both operands (x @ y.T)

        # sim_i[r, j] = S[row0 + r, j]   (rows of S)
        sim_i = lax.dot_general(img_blk, txt_all_ref[...], dn,
                                preferred_element_type=jnp.float32) * scale
        # sim_t[r, j] = S[j, row0 + r]   (rows of S.T)
        sim_t = lax.dot_general(txt_blk, img_all_ref[...], dn,
                                preferred_element_type=jnp.float32) * scale

        # Diagonal S[g, g] for this row block, straight from the embeddings (f32).
        base = jnp.sum(img_blk.astype(jnp.float32) * txt_blk.astype(jnp.float32),
                       axis=1, keepdims=True) * scale            # (tm, 1)

        col = lax.broadcasted_iota(jnp.int32, (1, b_pad), 1)
        row = lax.broadcasted_iota(jnp.int32, (tm, 1), 0) + row0
        valid_col = col < batch                                   # (1, b_pad)
        valid_row = row < batch                                   # (tm, 1)

        neg = jnp.float32(-1e30)

        def strip(s):
            """Returns (row-wise logsumexp, masked softplus(s - base) sum)."""
            s = jnp.where(valid_col, s, neg)
            m = jnp.max(s, axis=1, keepdims=True)                 # (tm, 1)
            e = jnp.exp(s - m)                                    # single full-size exp
            lse = m + jnp.log(jnp.sum(e, axis=1, keepdims=True))  # (tm, 1)
            # softplus(s - base) = (m - base) + log(exp(base - m) + e)
            sp = (m - base) + jnp.log(jnp.exp(base - m) + e)      # single full-size log
            sp = jnp.clip(sp, 0.0, 100.0)                         # torch BCE clamp (>=0 guards underflow)
            sp_rows = jnp.sum(jnp.where(valid_col, sp, 0.0), axis=1, keepdims=True)
            bce = jnp.sum(jnp.where(valid_row, sp_rows, 0.0))
            return lse, bce

        lse_i, bce_i = strip(sim_i)
        lse_t, bce_t = strip(sim_t)

        # Cross entropy: sum_r [ lse(S[r,:]) - S[r,r] ] + [ lse(S[:,r]) - S[r,r] ]
        ce_rows = (lse_i - base) + (lse_t - base)                 # (tm, 1)
        ce_part = jnp.sum(jnp.where(valid_row, ce_rows, 0.0))

        # The BCE sums above include the diagonal; each valid row contributed
        # softplus(0) = ln2 to each strip.  Subtract analytically.
        n_valid = jnp.clip(batch - row0, 0, tm).astype(jnp.float32)
        bce_part = bce_i + bce_t - (2.0 * _LOG2) * n_valid

        # Lane-dense partial-sum tile: ce in lane 0, bce in lane 1.
        lane = lax.broadcasted_iota(jnp.int32, (8, 128), 1)
        tile = jnp.where(lane == 0, ce_part,
                         jnp.where(lane == 1, bce_part, 0.0)).astype(jnp.float32)
        out_ref[0] = tile

    return kernel


def _pallas_partials(img, txt, *, temperature, batch, tm, b_pad, vmem_limit,
                     single_buffer):
    nblk = b_pad // tm
    D = img.shape[1]
    kernel = _make_kernel(temperature, batch, tm, b_pad)

    def resident_spec():
        if single_buffer:
            return pl.BlockSpec((b_pad, D), lambda i: (0, 0),
                                pipeline_mode=pl.Buffered(1))
        return pl.BlockSpec((b_pad, D), lambda i: (0, 0))

    return pl.pallas_call(
        kernel,
        out_shape=jax.ShapeDtypeStruct((nblk, 8, 128), jnp.float32),
        grid_spec=pltpu.PrefetchScalarGridSpec(
            num_scalar_prefetch=0,
            grid=(nblk,),
            in_specs=[resident_spec(), resident_spec()],
            out_specs=pl.BlockSpec((1, 8, 128), lambda i: (i, 0, 0)),
        ),
        compiler_params=pltpu.CompilerParams(
            dimension_semantics=("parallel",),
            vmem_limit_bytes=int(vmem_limit)),
    )(img, txt)


def cepw_loss(image_embeddings, text_embeddings, temperature=1.0):
    """image_embeddings, text_embeddings: [batch, emb_dim]. Returns dict of scalars."""
    B, D = image_embeddings.shape
    assert text_embeddings.shape == (B, D)
    assert B >= 2, "CEPWLoss needs batch >= 2 (off-diagonal pairs)."

    b8 = _round_up(B, 8)

    # VMEM-capacity-aware row-tile cap (v5e/v6e 128 MiB -> up to 512; v7x 64 MiB -> 256).
    try:
        vmem_cap = int(pltpu.get_tpu_info().vmem_capacity_bytes)
    except Exception:
        vmem_cap = 64 * 1024 * 1024
    tm_cap = 512 if vmem_cap >= (96 << 20) else 256

    # Pick tm minimizing column padding, preferring even nblk, then larger tm.
    best = None
    for cand in range(8, min(tm_cap, b8) + 1, 8):
        bp = _round_up(b8, cand)
        nb = bp // cand
        key_ = (bp, 0 if (nb == 1 or nb % 2 == 0) else 1, -cand)
        if best is None or key_ < best[0]:
            best = (key_, cand, bp)
    _, tm, b_pad = best
    nblk = b_pad // tm

    if b_pad != B:
        pad = ((0, b_pad - B), (0, 0))
        img = jnp.pad(image_embeddings, pad)
        txt = jnp.pad(text_embeddings, pad)
    else:
        img, txt = image_embeddings, text_embeddings

    # Explicit VMEM budget: residents (single-buffered) + 2 f32 strips + temporaries.
    itemsize = jnp.dtype(img.dtype).itemsize
    d_lanes = _round_up(D, 128)
    b_lanes = _round_up(b_pad, 128)
    resident_bytes = 2 * b_pad * d_lanes * itemsize
    strip_bytes = 2 * tm * b_lanes * 4
    temp_bytes = 4 * tm * b_lanes * 4
    out_bytes = 2 * 8 * 128 * 4
    vmem_limit = int(1.3 * (resident_bytes + strip_bytes + temp_bytes + out_bytes))
    vmem_limit = max(vmem_limit, 32 << 20)
    vmem_limit = min(vmem_limit, int(0.9 * vmem_cap))

    common = dict(temperature=temperature, batch=B, tm=tm, b_pad=b_pad,
                  vmem_limit=vmem_limit)
    try:
        partials = _pallas_partials(img, txt, single_buffer=True, **common)
    except Exception:
        # Fallback if this Pallas build rejects single-buffered pipeline_mode.
        partials = _pallas_partials(img, txt, single_buffer=False, **common)

    ce_sum = jnp.sum(partials[:, 0, 0])
    bce_sum = jnp.sum(partials[:, 0, 1])
    total_ce = ce_sum / B
    total_bce = bce_sum / (B * (B - 1))
    return {
        "total_loss": (total_ce + total_bce) / 4.0,
        "cross_entropy_loss": total_ce / 2.0,
        "bce_loss": total_bce / 2.0,
    }


def _reference(image_embeddings, text_embeddings, temperature=1.0):
    img = image_embeddings.astype(jnp.float32)
    txt = text_embeddings.astype(jnp.float32)
    sim = jnp.dot(img, txt.T, precision=lax.Precision.HIGHEST) / temperature
    b = sim.shape[0]
    diag = jnp.diag(sim)

    lse_rows = jax.scipy.special.logsumexp(sim, axis=1)
    lse_cols = jax.scipy.special.logsumexp(sim, axis=0)
    total_ce = jnp.mean(lse_rows - diag) + jnp.mean(lse_cols - diag)

    def sp(x):  # -log(sigmoid(-x)) = softplus(x), clamped like torch BCE
        return jnp.minimum(jnp.maximum(x, 0.0) + jnp.log1p(jnp.exp(-jnp.abs(x))), 100.0)

    off = ~jnp.eye(b, dtype=bool)
    base = diag[:, None]
    bce_img = jnp.sum(jnp.where(off, sp(sim - base), 0.0)) / (b * (b - 1))
    bce_txt = jnp.sum(jnp.where(off, sp(sim.T - base), 0.0)) / (b * (b - 1))
    total_bce = bce_img + bce_txt

    return {
        "total_loss": (total_ce + total_bce) / 4.0,
        "cross_entropy_loss": total_ce / 2.0,
        "bce_loss": total_bce / 2.0,
    }


def _check(out, ref, tag):
    for name in ("total_loss", "cross_entropy_loss", "bce_loss"):
        got, want = out[name], ref[name]
        assert jnp.allclose(got, want, rtol=1e-4, atol=1e-4), (tag, name, got, want)


if __name__ == "__main__":
    key = jax.random.PRNGKey(0)
    k1, k2, k3, k4 = jax.random.split(key, 4)

    # Test 1: small shape, single grid block, no padding.
    batch, emb_dim, temp = 8, 32, 0.5
    img = jax.random.normal(k1, (batch, emb_dim), dtype=jnp.float32)
    txt = jax.random.normal(k2, (batch, emb_dim), dtype=jnp.float32)
    out = cepw_loss(img, txt, temperature=temp)
    out = {k: jax.block_until_ready(v) for k, v in out.items()}
    _check(out, _reference(img, txt, temperature=temp), "small")

    # Test 2: multiple row blocks (B=300 -> tm=152, nblk=2) + padded rows/columns.
    batch2, emb_dim2, temp2 = 300, 64, 1.0
    img2 = 0.2 * jax.random.normal(k3, (batch2, emb_dim2), dtype=jnp.float32)
    txt2 = 0.2 * jax.random.normal(k4, (batch2, emb_dim2), dtype=jnp.float32)
    out2 = cepw_loss(img2, txt2, temperature=temp2)
    out2 = {k: jax.block_until_ready(v) for k, v in out2.items()}
    _check(out2, _reference(img2, txt2, temperature=temp2), "tiled")

    print("KERNEL_OK")
</pallas_src>

<mosaic_0001>
module attributes {stable_mosaic.version = 11 : i64} {
  func.func @kernel(%arg0: i32, %arg1: memref<8x32xf32, #tpu.memory_space<vmem>>, %arg2: memref<8x32xf32, #tpu.memory_space<vmem>>, %arg3: memref<1x8x128xf32, #tpu.memory_space<vmem>>) attributes {dimension_semantics = [#tpu.dimension_semantics<parallel>], iteration_bounds = array<i64: 1>, scalar_prefetch = 0 : i64, scratch_operands = 0 : i64, tpu.core_type = #tpu.core_type<tc>, window_params = [{pipeline_mode = #tpu.pipeline_mode<synchronous>, transform_indices = @transform_0, window_bounds = array<i64: 8, 32>}, {pipeline_mode = #tpu.pipeline_mode<synchronous>, transform_indices = @transform_1, window_bounds = array<i64: 8, 32>}, {transform_indices = @transform_2, window_bounds = array<i64: 1, 8, 128>}]} {
    %c8_i32 = arith.constant 8 : i32
    %0 = arith.muli %arg0, %c8_i32 : i32
    %1 = tpu.assume_multiple %0, 8 : i32
    %2 = arith.index_cast %1 : i32 to index
    %c0 = arith.constant 0 : index
    %3 = vector.load %arg1[%2, %c0] : memref<8x32xf32, #tpu.memory_space<vmem>>, vector<8x32xf32>
    %4 = arith.index_cast %1 : i32 to index
    %c0_0 = arith.constant 0 : index
    %5 = vector.load %arg2[%4, %c0_0] : memref<8x32xf32, #tpu.memory_space<vmem>>, vector<8x32xf32>
    %c0_1 = arith.constant 0 : index
    %c0_2 = arith.constant 0 : index
    %6 = vector.load %arg2[%c0_1, %c0_2] : memref<8x32xf32, #tpu.memory_space<vmem>>, vector<8x32xf32>
    %cst = arith.constant dense<0.000000e+00> : vector<8x8xf32>
    %7 = tpu.matmul %3, %6, %cst {dimension_numbers = #tpu.dot_dimension_numbers<[1], [1], [0], [0], [0, 0, 1, 0], [], []>} : vector<8x32xf32>, vector<8x32xf32>, vector<8x8xf32> -> vector<8x8xf32>
    %cst_3 = arith.constant 2.000000e+00 : f32
    %8 = vector.broadcast %cst_3 : f32 to vector<8x8xf32>
    %9 = arith.mulf %7, %8 : vector<8x8xf32>
    %c0_4 = arith.constant 0 : index
    %c0_5 = arith.constant 0 : index
    %10 = vector.load %arg1[%c0_4, %c0_5] : memref<8x32xf32, #tpu.memory_space<vmem>>, vector<8x32xf32>
    %cst_6 = arith.constant dense<0.000000e+00> : vector<8x8xf32>
    %11 = tpu.matmul %5, %10, %cst_6 {dimension_numbers = #tpu.dot_dimension_numbers<[1], [1], [0], [0], [0, 0, 1, 0], [], []>} : vector<8x32xf32>, vector<8x32xf32>, vector<8x8xf32> -> vector<8x8xf32>
    %cst_7 = arith.constant 2.000000e+00 : f32
    %12 = vector.broadcast %cst_7 : f32 to vector<8x8xf32>
    %13 = arith.mulf %11, %12 : vector<8x8xf32>
    %14 = arith.mulf %3, %5 : vector<8x32xf32>
    %cst_8 = arith.constant dense<0.000000e+00> : vector<8xf32>
    %15 = vector.multi_reduction <add>, %14, %cst_8 [1] : vector<8x32xf32> to vector<8xf32>
    %16 = vector.shape_cast %15 : vector<8xf32> to vector<8x1xf32>
    %cst_9 = arith.constant 2.000000e+00 : f32
    %17 = vector.broadcast %cst_9 : f32 to vector<8x1xf32>
    %18 = arith.mulf %16, %17 : vector<8x1xf32>
    %19 = tpu.iota {dimensions = array<i32: 1>} : vector<1x8xi32>
    %20 = tpu.iota {dimensions = array<i32: 0>} : vector<8x1xi32>
    %21 = vector.broadcast %0 : i32 to vector<8x1xi32>
    %22 = arith.addi %20, %21 : vector<8x1xi32>
    %c8_i32_10 = arith.constant 8 : i32
    %23 = vector.broadcast %c8_i32_10 : i32 to vector<1x8xi32>
    %24 = arith.cmpi slt, %19, %23 : vector<1x8xi32>
    %c8_i32_11 = arith.constant 8 : i32
    %25 = vector.broadcast %c8_i32_11 : i32 to vector<8x1xi32>
    %26 = arith.cmpi slt, %22, %25 : vector<8x1xi32>
    %cst_12 = arith.constant -1.000000e+30 : f32
    %27 = vector.shape_cast %24 : vector<1x8xi1> to vector<1x8xi1>
    %28 = vector.broadcast %27 : vector<1x8xi1> to vector<8x8xi1>
    %29 = vector.broadcast %cst_12 : f32 to vector<8x8xf32>
    %30 = arith.select %28, %9, %29 : vector<8x8xi1>, vector<8x8xf32>
    %cst_13 = arith.constant dense<0xFF800000> : vector<8xf32>
    %31 = vector.multi_reduction <maximumf>, %30, %cst_13 [1] : vector<8x8xf32> to vector<8xf32>
    %32 = vector.shape_cast %31 : vector<8xf32> to vector<8x1xf32>
    %33 = vector.broadcast %32 : vector<8x1xf32> to vector<8x8xf32>
    %34 = arith.subf %30, %33 : vector<8x8xf32>
    %35 = math.exp %34 : vector<8x8xf32>
    %cst_14 = arith.constant dense<0.000000e+00> : vector<8xf32>
    %36 = vector.multi_reduction <add>, %35, %cst_14 [1] : vector<8x8xf32> to vector<8xf32>
    %37 = vector.shape_cast %36 : vector<8xf32> to vector<8x1xf32>
    %38 = math.log %37 : vector<8x1xf32>
    %39 = arith.addf %32, %38 : vector<8x1xf32>
    %40 = arith.subf %32, %18 : vector<8x1xf32>
    %41 = arith.subf %18, %32 : vector<8x1xf32>
    %42 = math.exp %41 : vector<8x1xf32>
    %43 = vector.broadcast %42 : vector<8x1xf32> to vector<8x8xf32>
    %44 = arith.addf %43, %35 : vector<8x8xf32>
    %45 = math.log %44 : vector<8x8xf32>
    %46 = vector.broadcast %40 : vector<8x1xf32> to vector<8x8xf32>
    %47 = arith.addf %46, %45 : vector<8x8xf32>
    %cst_15 = arith.constant 0.000000e+00 : f32
    %cst_16 = arith.constant 1.000000e+02 : f32
    %48 = vector.broadcast %cst_15 : f32 to vector<8x8xf32>
    %49 = arith.maximumf %48, %47 : vector<8x8xf32>
    %50 = vector.broadcast %cst_16 : f32 to vector<8x8xf32>
    %51 = arith.minimumf %50, %49 : vector<8x8xf32>
    %cst_17 = arith.constant 0.000000e+00 : f32
    %52 = vector.shape_cast %24 : vector<1x8xi1> to vector<1x8xi1>
    %53 = vector.broadcast %52 : vector<1x8xi1> to vector<8x8xi1>
    %54 = vector.broadcast %cst_17 : f32 to vector<8x8xf32>
    %55 = arith.select %53, %51, %54 : vector<8x8xi1>, vector<8x8xf32>
    %cst_18 = arith.constant dense<0.000000e+00> : vector<8xf32>
    %56 = vector.multi_reduction <add>, %55, %cst_18 [1] : vector<8x8xf32> to vector<8xf32>
    %57 = vector.shape_cast %56 : vector<8xf32> to vector<8x1xf32>
    %cst_19 = arith.constant 0.000000e+00 : f32
    %58 = vector.broadcast %cst_19 : f32 to vector<8x1xf32>
    %59 = arith.select %26, %57, %58 : vector<8x1xi1>, vector<8x1xf32>
    %60 = vector.shape_cast %59 : vector<8x1xf32> to vector<1x8x1xf32>
    %cst_20 = arith.constant dense<0.000000e+00> : vector<1xf32>
    %61 = vector.multi_reduction <add>, %60, %cst_20 [1, 2] : vector<1x8x1xf32> to vector<1xf32>
    %62 = vector.shape_cast %61 : vector<1xf32> to vector<1x1x1xf32>
    %63 = vector.extract %62[0, 0, 0] : f32 from vector<1x1x1xf32>
    %cst_21 = arith.constant -1.000000e+30 : f32
    %64 = vector.shape_cast %24 : vector<1x8xi1> to vector<1x8xi1>
    %65 = vector.broadcast %64 : vector<1x8xi1> to vector<8x8xi1>
    %66 = vector.broadcast %cst_21 : f32 to vector<8x8xf32>
    %67 = arith.select %65, %13, %66 : vector<8x8xi1>, vector<8x8xf32>
    %cst_22 = arith.constant dense<0xFF800000> : vector<8xf32>
    %68 = vector.multi_reduction <maximumf>, %67, %cst_22 [1] : vector<8x8xf32> to vector<8xf32>
    %69 = vector.shape_cast %68 : vector<8xf32> to vector<8x1xf32>
    %70 = vector.broadcast %69 : vector<8x1xf32> to vector<8x8xf32>
    %71 = arith.subf %67, %70 : vector<8x8xf32>
    %72 = math.exp %71 : vector<8x8xf32>
    %cst_23 = arith.constant dense<0.000000e+00> : vector<8xf32>
    %73 = vector.multi_reduction <add>, %72, %cst_23 [1] : vector<8x8xf32> to vector<8xf32>
    %74 = vector.shape_cast %73 : vector<8xf32> to vector<8x1xf32>
    %75 = math.log %74 : vector<8x1xf32>
    %76 = arith.addf %69, %75 : vector<8x1xf32>
    %77 = arith.subf %69, %18 : vector<8x1xf32>
    %78 = arith.subf %18, %69 : vector<8x1xf32>
    %79 = math.exp %78 : vector<8x1xf32>
    %80 = vector.broadcast %79 : vector<8x1xf32> to vector<8x8xf32>
    %81 = arith.addf %80, %72 : vector<8x8xf32>
    %82 = math.log %81 : vector<8x8xf32>
    %83 = vector.broadcast %77 : vector<8x1xf32> to vector<8x8xf32>
    %84 = arith.addf %83, %82 : vector<8x8xf32>
    %cst_24 = arith.constant 0.000000e+00 : f32
    %cst_25 = arith.constant 1.000000e+02 : f32
    %85 = vector.broadcast %cst_24 : f32 to vector<8x8xf32>
    %86 = arith.maximumf %85, %84 : vector<8x8xf32>
    %87 = vector.broadcast %cst_25 : f32 to vector<8x8xf32>
    %88 = arith.minimumf %87, %86 : vector<8x8xf32>
    %cst_26 = arith.constant 0.000000e+00 : f32
    %89 = vector.shape_cast %24 : vector<1x8xi1> to vector<1x8xi1>
    %90 = vector.broadcast %89 : vector<1x8xi1> to vector<8x8xi1>
    %91 = vector.broadcast %cst_26 : f32 to vector<8x8xf32>
    %92 = arith.select %90, %88, %91 : vector<8x8xi1>, vector<8x8xf32>
    %cst_27 = arith.constant dense<0.000000e+00> : vector<8xf32>
    %93 = vector.multi_reduction <add>, %92, %cst_27 [1] : vector<8x8xf32> to vector<8xf32>
    %94 = vector.shape_cast %93 : vector<8xf32> to vector<8x1xf32>
    %cst_28 = arith.constant 0.000000e+00 : f32
    %95 = vector.broadcast %cst_28 : f32 to vector<8x1xf32>
    %96 = arith.select %26, %94, %95 : vector<8x1xi1>, vector<8x1xf32>
    %97 = vector.shape_cast %96 : vector<8x1xf32> to vector<1x8x1xf32>
    %cst_29 = arith.constant dense<0.000000e+00> : vector<1xf32>
    %98 = vector.multi_reduction <add>, %97, %cst_29 [1, 2] : vector<1x8x1xf32> to vector<1xf32>
    %99 = vector.shape_cast %98 : vector<1xf32> to vector<1x1x1xf32>
    %100 = vector.extract %99[0, 0, 0] : f32 from vector<1x1x1xf32>
    %101 = arith.subf %39, %18 : vector<8x1xf32>
    %102 = arith.subf %76, %18 : vector<8x1xf32>
    %103 = arith.addf %101, %102 : vector<8x1xf32>
    %cst_30 = arith.constant 0.000000e+00 : f32
    %104 = vector.broadcast %cst_30 : f32 to vector<8x1xf32>
    %105 = arith.select %26, %103, %104 : vector<8x1xi1>, vector<8x1xf32>
    %106 = vector.shape_cast %105 : vector<8x1xf32> to vector<1x8x1xf32>
    %cst_31 = arith.constant dense<0.000000e+00> : vector<1xf32>
    %107 = vector.multi_reduction <add>, %106, %cst_31 [1, 2] : vector<1x8x1xf32> to vector<1xf32>
    %108 = vector.shape_cast %107 : vector<1xf32> to vector<1x1x1xf32>
    %109 = vector.extract %108[0, 0, 0] : f32 from vector<1x1x1xf32>
    %c8_i32_32 = arith.constant 8 : i32
    %110 = arith.subi %c8_i32_32, %0 : i32
    %c0_i32 = arith.constant 0 : i32
    %c8_i32_33 = arith.constant 8 : i32
    %111 = arith.maxsi %c0_i32, %110 : i32
    %112 = arith.minsi %c8_i32_33, %111 : i32
    %113 = arith.sitofp %112 : i32 to f32
    %114 = arith.addf %63, %100 : f32
    %cst_34 = arith.constant 1.38629436 : f32
    %115 = arith.mulf %cst_34, %113 : f32
    %116 = arith.subf %114, %115 : f32
    %117 = tpu.iota {dimensions = array<i32: 1>} : vector<8x128xi32>
    %c0_i32_35 = arith.constant 0 : i32
    %118 = vector.broadcast %c0_i32_35 : i32 to vector<8x128xi32>
    %119 = arith.cmpi eq, %117, %118 : vector<8x128xi32>
    %c1_i32 = arith.constant 1 : i32
    %120 = vector.broadcast %c1_i32 : i32 to vector<8x128xi32>
    %121 = arith.cmpi eq, %117, %120 : vector<8x128xi32>
    %cst_36 = arith.constant 0.000000e+00 : f32
    %122 = vector.broadcast %116 : f32 to vector<8x128xf32>
    %123 = vector.broadcast %cst_36 : f32 to vector<8x128xf32>
    %124 = arith.select %121, %122, %123 : vector<8x128xi1>, vector<8x128xf32>
    %125 = vector.broadcast %109 : f32 to vector<8x128xf32>
    %126 = arith.select %119, %125, %124 : vector<8x128xi1>, vector<8x128xf32>
    %c0_37 = arith.constant 0 : index
    %c0_38 = arith.constant 0 : index
    %c0_39 = arith.constant 0 : index
    %127 = vector.load %arg3[%c0_37, %c0_38, %c0_39] : memref<1x8x128xf32, #tpu.memory_space<vmem>>, vector<1x8x128xf32>
    %128 = vector.shape_cast %127 : vector<1x8x128xf32> to vector<8x128xf32>
    %129 = vector.shape_cast %126 : vector<8x128xf32> to vector<1x8x128xf32>
    tpu.vector_store %arg3[%c0_37, %c0_38, %c0_39], %129 {strides = array<i32>} : memref<1x8x128xf32, #tpu.memory_space<vmem>>, vector<1x8x128xf32>,
    return
  }
  func.func @transform_0(%arg0: i32) -> (i32, i32) {
    %c0_i32 = arith.constant 0 : i32
    %c0_i32_0 = arith.constant 0 : i32
    %c0_i32_1 = arith.constant 0 : i32
    return %c0_i32, %c0_i32_0 : i32, i32
  }
  func.func @transform_1(%arg0: i32) -> (i32, i32) {
    %c0_i32 = arith.constant 0 : i32
    %c0_i32_0 = arith.constant 0 : i32
    %c0_i32_1 = arith.constant 0 : i32
    return %c0_i32, %c0_i32_0 : i32, i32
  }
  func.func @transform_2(%arg0: i32) -> (i32, i32, i32) {
    %c0_i32 = arith.constant 0 : i32
    %c0_i32_0 = arith.constant 0 : i32
    %c0_i32_1 = arith.constant 0 : i32
    return %arg0, %c0_i32, %c0_i32_0 : i32, i32, i32
  }
}

module attributes {stable_mosaic.version = 11 : i64} {
  func.func @kernel(%arg0: i32, %arg1: memref<8x32xf32, #tpu.memory_space<vmem>>, %arg2: memref<8x32xf32, #tpu.memory_space<vmem>>, %arg3: memref<1x8x128xf32, #tpu.memory_space<vmem>>) attributes {dimension_semantics = [#tpu.dimension_semantics<parallel>], iteration_bounds = array<i64: 1>, scalar_prefetch = 0 : i64, scratch_operands = 0 : i64, tpu.core_type = #tpu.core_type<tc>, window_params = [{pipeline_mode = #tpu.pipeline_mode<synchronous>, transform_indices = @transform_0, window_bounds = array<i64: 8, 32>}, {pipeline_mode = #tpu.pipeline_mode<synchronous>, transform_indices = @transform_1, window_bounds = array<i64: 8, 32>}, {transform_indices = @transform_2, window_bounds = array<i64: 1, 8, 128>}]} {
    %c8_i32 = arith.constant 8 : i32
    %0 = arith.muli %arg0, %c8_i32 : i32
    %1 = tpu.assume_multiple %0, 8 : i32
    %2 = arith.index_cast %1 : i32 to index
    %c0 = arith.constant 0 : index
    %3 = vector.load %arg1[%2, %c0] : memref<8x32xf32, #tpu.memory_space<vmem>>, vector<8x32xf32>
    %4 = arith.index_cast %1 : i32 to index
    %c0_0 = arith.constant 0 : index
    %5 = vector.load %arg2[%4, %c0_0] : memref<8x32xf32, #tpu.memory_space<vmem>>, vector<8x32xf32>
    %c0_1 = arith.constant 0 : index
    %c0_2 = arith.constant 0 : index
    %6 = vector.load %arg2[%c0_1, %c0_2] : memref<8x32xf32, #tpu.memory_space<vmem>>, vector<8x32xf32>
    %cst = arith.constant dense<0.000000e+00> : vector<8x8xf32>
    %7 = tpu.matmul %3, %6, %cst {dimension_numbers = #tpu.dot_dimension_numbers<[1], [1], [0], [0], [0, 0, 1, 0], [], []>} : vector<8x32xf32>, vector<8x32xf32>, vector<8x8xf32> -> vector<8x8xf32>
    %cst_3 = arith.constant 2.000000e+00 : f32
    %8 = vector.broadcast %cst_3 : f32 to vector<8x8xf32>
    %9 = arith.mulf %7, %8 : vector<8x8xf32>
    %c0_4 = arith.constant 0 : index
    %c0_5 = arith.constant 0 : index
    %10 = vector.load %arg1[%c0_4, %c0_5] : memref<8x32xf32, #tpu.memory_space<vmem>>, vector<8x32xf32>
    %cst_6 = arith.constant dense<0.000000e+00> : vector<8x8xf32>
    %11 = tpu.matmul %5, %10, %cst_6 {dimension_numbers = #tpu.dot_dimension_numbers<[1], [1], [0], [0], [0, 0, 1, 0], [], []>} : vector<8x32xf32>, vector<8x32xf32>, vector<8x8xf32> -> vector<8x8xf32>
    %cst_7 = arith.constant 2.000000e+00 : f32
    %12 = vector.broadcast %cst_7 : f32 to vector<8x8xf32>
    %13 = arith.mulf %11, %12 : vector<8x8xf32>
    %14 = arith.mulf %3, %5 : vector<8x32xf32>
    %cst_8 = arith.constant dense<0.000000e+00> : vector<8xf32>
    %15 = vector.multi_reduction <add>, %14, %cst_8 [1] : vector<8x32xf32> to vector<8xf32>
    %16 = vector.shape_cast %15 : vector<8xf32> to vector<8x1xf32>
    %cst_9 = arith.constant 2.000000e+00 : f32
    %17 = vector.broadcast %cst_9 : f32 to vector<8x1xf32>
    %18 = arith.mulf %16, %17 : vector<8x1xf32>
    %19 = tpu.iota {dimensions = array<i32: 1>} : vector<1x8xi32>
    %20 = tpu.iota {dimensions = array<i32: 0>} : vector<8x1xi32>
    %21 = vector.broadcast %0 : i32 to vector<8x1xi32>
    %22 = arith.addi %20, %21 : vector<8x1xi32>
    %c8_i32_10 = arith.constant 8 : i32
    %23 = vector.broadcast %c8_i32_10 : i32 to vector<1x8xi32>
    %24 = arith.cmpi slt, %19, %23 : vector<1x8xi32>
    %c8_i32_11 = arith.constant 8 : i32
    %25 = vector.broadcast %c8_i32_11 : i32 to vector<8x1xi32>
    %26 = arith.cmpi slt, %22, %25 : vector<8x1xi32>
    %cst_12 = arith.constant -1.000000e+30 : f32
    %27 = vector.shape_cast %24 : vector<1x8xi1> to vector<1x8xi1>
    %28 = vector.broadcast %27 : vector<1x8xi1> to vector<8x8xi1>
    %29 = vector.broadcast %cst_12 : f32 to vector<8x8xf32>
    %30 = arith.select %28, %9, %29 : vector<8x8xi1>, vector<8x8xf32>
    %cst_13 = arith.constant dense<0xFF800000> : vector<8xf32>
    %31 = vector.multi_reduction <maximumf>, %30, %cst_13 [1] : vector<8x8xf32> to vector<8xf32>
    %32 = vector.shape_cast %31 : vector<8xf32> to vector<8x1xf32>
    %33 = vector.broadcast %32 : vector<8x1xf32> to vector<8x8xf32>
    %34 = arith.subf %30, %33 : vector<8x8xf32>
    %35 = math.exp %34 : vector<8x8xf32>
    %cst_14 = arith.constant dense<0.000000e+00> : vector<8xf32>
    %36 = vector.multi_reduction <add>, %35, %cst_14 [1] : vector<8x8xf32> to vector<8xf32>
    %37 = vector.shape_cast %36 : vector<8xf32> to vector<8x1xf32>
    %38 = math.log %37 : vector<8x1xf32>
    %39 = arith.addf %32, %38 : vector<8x1xf32>
    %40 = arith.subf %32, %18 : vector<8x1xf32>
    %41 = arith.subf %18, %32 : vector<8x1xf32>
    %42 = math.exp %41 : vector<8x1xf32>
    %43 = vector.broadcast %42 : vector<8x1xf32> to vector<8x8xf32>
    %44 = arith.addf %43, %35 : vector<8x8xf32>
    %45 = math.log %44 : vector<8x8xf32>
    %46 = vector.broadcast %40 : vector<8x1xf32> to vector<8x8xf32>
    %47 = arith.addf %46, %45 : vector<8x8xf32>
    %cst_15 = arith.constant 0.000000e+00 : f32
    %cst_16 = arith.constant 1.000000e+02 : f32
    %48 = vector.broadcast %cst_15 : f32 to vector<8x8xf32>
    %49 = arith.maximumf %48, %47 : vector<8x8xf32>
    %50 = vector.broadcast %cst_16 : f32 to vector<8x8xf32>
    %51 = arith.minimumf %50, %49 : vector<8x8xf32>
    %cst_17 = arith.constant 0.000000e+00 : f32
    %52 = vector.shape_cast %24 : vector<1x8xi1> to vector<1x8xi1>
    %53 = vector.broadcast %52 : vector<1x8xi1> to vector<8x8xi1>
    %54 = vector.broadcast %cst_17 : f32 to vector<8x8xf32>
    %55 = arith.select %53, %51, %54 : vector<8x8xi1>, vector<8x8xf32>
    %cst_18 = arith.constant dense<0.000000e+00> : vector<8xf32>
    %56 = vector.multi_reduction <add>, %55, %cst_18 [1] : vector<8x8xf32> to vector<8xf32>
    %57 = vector.shape_cast %56 : vector<8xf32> to vector<8x1xf32>
    %cst_19 = arith.constant 0.000000e+00 : f32
    %58 = vector.broadcast %cst_19 : f32 to vector<8x1xf32>
    %59 = arith.select %26, %57, %58 : vector<8x1xi1>, vector<8x1xf32>
    %60 = vector.shape_cast %59 : vector<8x1xf32> to vector<1x8x1xf32>
    %cst_20 = arith.constant dense<0.000000e+00> : vector<1xf32>
    %61 = vector.multi_reduction <add>, %60, %cst_20 [1, 2] : vector<1x8x1xf32> to vector<1xf32>
    %62 = vector.shape_cast %61 : vector<1xf32> to vector<1x1x1xf32>
    %63 = vector.extract %62[0, 0, 0] : f32 from vector<1x1x1xf32>
    %cst_21 = arith.constant -1.000000e+30 : f32
    %64 = vector.shape_cast %24 : vector<1x8xi1> to vector<1x8xi1>
    %65 = vector.broadcast %64 : vector<1x8xi1> to vector<8x8xi1>
    %66 = vector.broadcast %cst_21 : f32 to vector<8x8xf32>
    %67 = arith.select %65, %13, %66 : vector<8x8xi1>, vector<8x8xf32>
    %cst_22 = arith.constant dense<0xFF800000> : vector<8xf32>
    %68 = vector.multi_reduction <maximumf>, %67, %cst_22 [1] : vector<8x8xf32> to vector<8xf32>
    %69 = vector.shape_cast %68 : vector<8xf32> to vector<8x1xf32>
    %70 = vector.broadcast %69 : vector<8x1xf32> to vector<8x8xf32>
    %71 = arith.subf %67, %70 : vector<8x8xf32>
    %72 = math.exp %71 : vector<8x8xf32>
    %cst_23 = arith.constant dense<0.000000e+00> : vector<8xf32>
    %73 = vector.multi_reduction <add>, %72, %cst_23 [1] : vector<8x8xf32> to vector<8xf32>
    %74 = vector.shape_cast %73 : vector<8xf32> to vector<8x1xf32>
    %75 = math.log %74 : vector<8x1xf32>
    %76 = arith.addf %69, %75 : vector<8x1xf32>
    %77 = arith.subf %69, %18 : vector<8x1xf32>
    %78 = arith.subf %18, %69 : vector<8x1xf32>
    %79 = math.exp %78 : vector<8x1xf32>
    %80 = vector.broadcast %79 : vector<8x1xf32> to vector<8x8xf32>
    %81 = arith.addf %80, %72 : vector<8x8xf32>
    %82 = math.log %81 : vector<8x8xf32>
    %83 = vector.broadcast %77 : vector<8x1xf32> to vector<8x8xf32>
    %84 = arith.addf %83, %82 : vector<8x8xf32>
    %cst_24 = arith.constant 0.000000e+00 : f32
    %cst_25 = arith.constant 1.000000e+02 : f32
    %85 = vector.broadcast %cst_24 : f32 to vector<8x8xf32>
    %86 = arith.maximumf %85, %84 : vector<8x8xf32>
    %87 = vector.broadcast %cst_25 : f32 to vector<8x8xf32>
    %88 = arith.minimumf %87, %86 : vector<8x8xf32>
    %cst_26 = arith.constant 0.000000e+00 : f32
    %89 = vector.shape_cast %24 : vector<1x8xi1> to vector<1x8xi1>
    %90 = vector.broadcast %89 : vector<1x8xi1> to vector<8x8xi1>
    %91 = vector.broadcast %cst_26 : f32 to vector<8x8xf32>
    %92 = arith.select %90, %88, %91 : vector<8x8xi1>, vector<8x8xf32>
    %cst_27 = arith.constant dense<0.000000e+00> : vector<8xf32>
    %93 = vector.multi_reduction <add>, %92, %cst_27 [1] : vector<8x8xf32> to vector<8xf32>
    %94 = vector.shape_cast %93 : vector<8xf32> to vector<8x1xf32>
    %cst_28 = arith.constant 0.000000e+00 : f32
    %95 = vector.broadcast %cst_28 : f32 to vector<8x1xf32>
    %96 = arith.select %26, %94, %95 : vector<8x1xi1>, vector<8x1xf32>
    %97 = vector.shape_cast %96 : vector<8x1xf32> to vector<1x8x1xf32>
    %cst_29 = arith.constant dense<0.000000e+00> : vector<1xf32>
    %98 = vector.multi_reduction <add>, %97, %cst_29 [1, 2] : vector<1x8x1xf32> to vector<1xf32>
    %99 = vector.shape_cast %98 : vector<1xf32> to vector<1x1x1xf32>
    %100 = vector.extract %99[0, 0, 0] : f32 from vector<1x1x1xf32>
    %101 = arith.subf %39, %18 : vector<8x1xf32>
    %102 = arith.subf %76, %18 : vector<8x1xf32>
    %103 = arith.addf %101, %102 : vector<8x1xf32>
    %cst_30 = arith.constant 0.000000e+00 : f32
    %104 = vector.broadcast %cst_30 : f32 to vector<8x1xf32>
    %105 = arith.select %26, %103, %104 : vector<8x1xi1>, vector<8x1xf32>
    %106 = vector.shape_cast %105 : vector<8x1xf32> to vector<1x8x1xf32>
    %cst_31 = arith.constant dense<0.000000e+00> : vector<1xf32>
    %107 = vector.multi_reduction <add>, %106, %cst_31 [1, 2] : vector<1x8x1xf32> to vector<1xf32>
    %108 = vector.shape_cast %107 : vector<1xf32> to vector<1x1x1xf32>
    %109 = vector.extract %108[0, 0, 0] : f32 from vector<1x1x1xf32>
    %c8_i32_32 = arith.constant 8 : i32
    %110 = arith.subi %c8_i32_32, %0 : i32
    %c0_i32 = arith.constant 0 : i32
    %c8_i32_33 = arith.constant 8 : i32
    %111 = arith.maxsi %c0_i32, %110 : i32
    %112 = arith.minsi %c8_i32_33, %111 : i32
    %113 = arith.sitofp %112 : i32 to f32
    %114 = arith.addf %63, %100 : f32
    %cst_34 = arith.constant 1.38629436 : f32
    %115 = arith.mulf %cst_34, %113 : f32
    %116 = arith.subf %114, %115 : f32
    %117 = tpu.iota {dimensions = array<i32: 1>} : vector<8x128xi32>
    %c0_i32_35 = arith.constant 0 : i32
    %118 = vector.broadcast %c0_i32_35 : i32 to vector<8x128xi32>
    %119 = arith.cmpi eq, %117, %118 : vector<8x128xi32>
    %c1_i32 = arith.constant 1 : i32
    %120 = vector.broadcast %c1_i32 : i32 to vector<8x128xi32>
    %121 = arith.cmpi eq, %117, %120 : vector<8x128xi32>
    %cst_36 = arith.constant 0.000000e+00 : f32
    %122 = vector.broadcast %116 : f32 to vector<8x128xf32>
    %123 = vector.broadcast %cst_36 : f32 to vector<8x128xf32>
    %124 = arith.select %121, %122, %123 : vector<8x128xi1>, vector<8x128xf32>
    %125 = vector.broadcast %109 : f32 to vector<8x128xf32>
    %126 = arith.select %119, %125, %124 : vector<8x128xi1>, vector<8x128xf32>
    %c0_37 = arith.constant 0 : index
    %c0_38 = arith.constant 0 : index
    %c0_39 = arith.constant 0 : index
    %127 = vector.load %arg3[%c0_37, %c0_38, %c0_39] : memref<1x8x128xf32, #tpu.memory_space<vmem>>, vector<1x8x128xf32>
    %128 = vector.shape_cast %127 : vector<1x8x128xf32> to vector<8x128xf32>
    %129 = vector.shape_cast %126 : vector<8x128xf32> to vector<1x8x128xf32>
    tpu.vector_store %arg3[%c0_37, %c0_38, %c0_39], %129 {strides = array<i32>} : memref<1x8x128xf32, #tpu.memory_space<vmem>>, vector<1x8x128xf32>,
    return
  }
  func.func @transform_0(%arg0: i32) -> (i32, i32) {
    %c0_i32 = arith.constant 0 : i32
    %c0_i32_0 = arith.constant 0 : i32
    %c0_i32_1 = arith.constant 0 : i32
    return %c0_i32, %c0_i32_0 : i32, i32
  }
  func.func @transform_1(%arg0: i32) -> (i32, i32) {
    %c0_i32 = arith.constant 0 : i32
    %c0_i32_0 = arith.constant 0 : i32
    %c0_i32_1 = arith.constant 0 : i32
    return %c0_i32, %c0_i32_0 : i32, i32
  }
  func.func @transform_2(%arg0: i32) -> (i32, i32, i32) {
    %c0_i32 = arith.constant 0 : i32
    %c0_i32_0 = arith.constant 0 : i32
    %c0_i32_1 = arith.constant 0 : i32
    return %arg0, %c0_i32, %c0_i32_0 : i32, i32, i32
  }
}

</mosaic_0001>

<bundles_post_ra>
// kernel: tpu_custom_call.1
= control target key start
LH: loop header
LB: loop body
LE: loop exit
PB: predicated region body
PF: predicated region fallthrough
CT: control target
= control target key end

     0   :  { %7 = vsyncpa [#allocation3], 0  ;;  %s538_s0 = inlined_call_operand.hbm [shape: f32[8,32], index: 0, kind: input, shape index: {}]   ;;  %s539_s1 = inlined_call_operand.hbm [shape: f32[8,32], index: 1, kind: input, shape index: {}]   ;;  %s540_s2 = inlined_call_operand.hbm [shape: f32[1,8,128], index: 2, kind: output, shape index: {}]  }
   0x1   :  { %8 = vsyncpa [#allocation6], 0 }
   0x2   :  { %9 = vsyncpa [#allocation4], 0  ;;  %s455_s9 = smov [#allocation2]   ;;  %s456_s11 = smov [#allocation5]  }
   0x3   :  { %s16_s10 = sshll.u32 %s455_s9, 4  ;;  %s26_s12 = sshll.u32 %s456_s11, 4  ;;  %s17_s10 = int_to_ptr.vmem [resolvable:$true] %s16_s10  ;;  %s27_s12 = int_to_ptr.vmem [resolvable:$true] %s26_s12 }
   0x4   :  { %s383_s15 = scalar_lea.hbm %s538_s0, 128 }
   0x5   :  { %p384_p0 = scmp.ne.s32.totalorder %s538_s0, %s383_s15  ;;  %p387_p1 = scmp.lt.u32.totalorder %s383_s15, %s538_s0 }
   0x7   :  { %p389_p2 = pnand %p387_p1, %p384_p0 }
   0x9   :  { %392 = shalt.err (!%p389_p2)
}
   0xa   :  { %s393_s20 = scalar_lea.vmem %s17_s10, 128  ;;  %p398_p4 = scmp.lt.s32.totalorder %s17_s10, %s17_s10 }
   0xb   :  { %p394_p3 = scmp.ne.s32.totalorder %s17_s10, %s393_s20  ;;  %p399_p5 = scmp.lt.s32.totalorder %s393_s20, %s393_s20 }
   0xd   :  { %p400_p6 = por %p399_p5, %p398_p4 }
   0xf   :  { %p401_p7 = pnand %p400_p6, %p394_p3 }
  0x11   :  { %404 = shalt.err (!%p401_p7)
}
  0x12   :  { %19 = dma.hbm_to_vmem [thread:$0]  %s538_s0, 128, %s17_s10, [#allocation3]  }
  0x13   :  { %s405_s25 = scalar_lea.hbm %s539_s1, 128 }
  0x14   :  { %p406_p8 = scmp.ne.s32.totalorder %s539_s1, %s405_s25  ;;  %p409_p9 = scmp.lt.u32.totalorder %s405_s25, %s539_s1 }
  0x16   :  { %p411_p10 = pnand %p409_p9, %p406_p8 }
  0x18   :  { %414 = shalt.err (!%p411_p10)
}
  0x19   :  { %s415_s30 = scalar_lea.vmem %s27_s12, 128  ;;  %p420_p12 = scmp.lt.s32.totalorder %s27_s12, %s27_s12 }
  0x1a   :  { %p416_p11 = scmp.ne.s32.totalorder %s27_s12, %s415_s30  ;;  %p421_p13 = scmp.lt.s32.totalorder %s415_s30, %s415_s30 }
  0x1c   :  { %p422_p0 = por %p421_p13, %p420_p12 }
  0x1e   :  { %p423_p1 = pnand %p422_p0, %p416_p11 }
  0x20   :  { %426 = shalt.err (!%p423_p1)
}
  0x21   :  { %29 = dma.hbm_to_vmem [thread:$0]  %s539_s1, 128, %s27_s12, [#allocation6]  }
  0x22   :  { %449 = dma.done.wait [#allocation3], 128  }
  0x23   :  { %450 = vsyncadd [#allocation3], 4294967168 }
  0x24   :  { %451 = dma.done.wait [#allocation6], 128  }
  0x25   :  { %452 = vsyncadd [#allocation6], 4294967168  ;;  %v457_v0 = vmov 0.0   ;;  %vm458_vm0 = vmmov 0   ;;  %vm42_vm1 = vcmask 261120   ;;  %v41_v1 = vld [vmem:[#allocation5] sm:$0xff]  ;;  %v203_v5 = vlaneseq }
  0x26   :  { %346 = vmatprep.subr.mxu0 %v457_v0  ;;  %351 = vmatprep.subr.mxu1 %v457_v0  ;;  %v120_v2 = vld [vmem:[#allocation2] sm:$0xff]  ;;  %vm214_vm3 = vcmask 64512   ;;  %vm242_vm4 = vcmask 7168   ;;  %s459_s6 = smov [#allocation7]  }
  0x27   :  { %348 = vmatprep.mubr.msk.f32.mxu0 %vm458_vm0, %v457_v0  ;;  %353 = vmatprep.mubr.msk.f32.mxu1 %vm458_vm0, %v457_v0  ;;  %v198_v3 = vmul.f32 %v120_v2, %v41_v1  ;;  %v499_v6 = vand.u32 127, %v203_v5  ;;  %s327_s7 = sshll.u32 %s459_s6, 4  ;;  %s328_s7 = int_to_ptr.vmem [resolvable:$true] %s327_s7 }
  0x28   :  { %347 = vmatpush3.xpose.msk.msra.mxu0 %vm42_vm1, %v41_v1  ;;  %352 = vmatpush3.xpose.msk.msra.mxu1 %vm42_vm1, %v120_v2  ;;  %s427_s10 = scalar_lea.vmem %s328_s7, 128  ;;  %p432_p3 = scmp.lt.s32.totalorder %s328_s7, %s328_s7 }
  0x29   :  { %v199_v4 = vsel %vm42_vm1, %v198_v3, 0.0  ;;  %vm209_vm2 = vcmp.lt.s32.totalorder %v499_v6, 8  ;;  %vm315_vm5 = vcmp.eq.s32.totalorder %v499_v6, 1  ;;  %vm314_vm6 = vcmp.eq.s32.totalorder %v499_v6, 0  ;;  %p428_p2 = scmp.ne.s32.totalorder %s328_s7, %s427_s10  ;;  %p433_p4 = scmp.lt.s32.totalorder %s427_s10, %s427_s10 }
  0x2a   :  { %200 = vadd.xlane.f32.xlu0 %v199_v4 }
  0x2b   :  { %349 = vmatmul.mubr.msk.f32.vlgmr.msra.gmra.mrb[0].mxu0 %vm42_vm1, %v120_v2  ;;  %354 = vmatmul.mubr.msk.f32.vlgmr.msra.gmra.mrb[0].mxu1 %vm42_vm1, %v41_v1  ;;  %p434_p5 = por %p433_p4, %p432_p3 }
  0x2d   :  { %p435_p6 = pnand %p434_p5, %p428_p2 }
  0xb7   :  { %v201_v17 = vpop.xlane.xlu0 %200 }
  0xb8   :  { %v508_v18 = vmul.f32 2.0, %v201_v17 }
  0xfe   :  { %v115_v7 = vpop.f32.mrb[0].mxu0  ;;  %v193_v8 = vpop.f32.mrb[0].mxu1 }
  0xff   :  { %v119_v9 = vmul.f32 2.0, %v115_v7  ;;  %v197_v10 = vmul.f32 2.0, %v193_v8  ;;  %v355_v11 = vpop.f32.mrb[1].mxu1  ;;  %v350_v12 = vpop.f32.mrb[1].mxu0 }
 0x101   :  { %v253_v13 = vsel %vm209_vm2, %v197_v10, -1e+30  ;;  %v213_v14 = vsel %vm209_vm2, %v119_v9, -1e+30 }
 0x102   :  { %v254_v15 = vsel %vm214_vm3, %v253_v13, -inf  ;;  %v215_v16 = vsel %vm214_vm3, %v213_v14, -inf }
 0x103   :  { %255 = vmax.xlane.f32.xlu1 %v254_v15  ;;  %216 = vmax.xlane.f32.xlu0 %v215_v16 }
 0x190   :  { %v256_v19 = vpop.xlane.xlu1 %255  ;;  %v217_v20 = vpop.xlane.xlu0 %216 }
 0x191   :  { %v257_v21 = vsub.f32 %v253_v13, %v256_v19  ;;  %v267_v22 = vsub.f32 %v508_v18, %v256_v19  ;;  %v218_v23 = vsub.f32 %v213_v14, %v217_v20  ;;  %v228_v24 = vsub.f32 %v508_v18, %v217_v20 }
 0x192   :  { %v266_v38 = vsub.f32 %v256_v19, %v508_v18  ;;  %v227_v41 = vsub.f32 %v217_v20, %v508_v18 }
 0x193   :  { %v258_v25 = vmul.f32 1.442695, %v257_v21  ;;  %v268_v26 = vmul.f32 1.442695, %v267_v22  ;;  %v219_v27 = vmul.f32 1.442695, %v218_v23 }
 0x194   :  { %v229_v28 = vmul.f32 1.442695, %v228_v24 }
 0x195   :  { %367 = vpow2.f32 %v258_v25 }
 0x196   :  { %369 = vpow2.f32 %v268_v26 }
 0x197   :  { %371 = vpow2.f32 %v219_v27 }
 0x198   :  { %373 = vpow2.f32 %v229_v28 }
 0x19f   :  { %v368_v29 = vpop.eup %367 }
 0x1a0   :  { %v370_v30 = vpop.eup %369  ;;  %v260_v31 = vsel %vm214_vm3, %v368_v29, 0.0 }
 0x1a1   :  { %v372_v32 = vpop.eup %371  ;;  %261 = vadd.xlane.f32.xlu0 %v260_v31  ;;  %v270_v33 = vadd.f32 %v370_v30, %v368_v29 }
 0x1a2   :  { %v374_v34 = vpop.eup %373  ;;  %v221_v35 = vsel %vm214_vm3, %v372_v32, 0.0 }
 0x1a3   :  { %222 = vadd.xlane.f32.xlu1 %v221_v35  ;;  %375 = vlog2.f32 %v270_v33  ;;  %v231_v36 = vadd.f32 %v374_v34, %v372_v32 }
 0x1a5   :  { %377 = vlog2.f32 %v231_v36 }
 0x1ad   :  { %v376_v37 = vpop.eup %375 }
 0x1ae   :  { %v272_v39 = vmul.f32 0.6931472, %v376_v37 }
 0x1af   :  { %v378_v40 = vpop.eup %377 }
 0x1b0   :  { %v273_v42 = vadd.f32 %v272_v39, %v266_v38  ;;  %v233_v43 = vmul.f32 0.6931472, %v378_v40 }
 0x1b2   :  { %v274_v44 = vmax.f32 %v273_v42, 0.0  ;;  %v234_v45 = vadd.f32 %v233_v43, %v227_v41 }
 0x1b4   :  { %v275_v46 = vmin.f32 %v274_v44, 100.0  ;;  %v235_v47 = vmax.f32 %v234_v45, 0.0 }
 0x1b6   :  { %v276_v48 = vsel %vm209_vm2, %v275_v46, 0.0  ;;  %v236_v49 = vmin.f32 %v235_v47, 100.0 }
 0x1b7   :  { %v277_v50 = vsel %vm214_vm3, %v276_v48, 0.0 }
 0x1b8   :  { %278 = vadd.xlane.f32.xlu0 %v277_v50  ;;  %v237_v51 = vsel %vm209_vm2, %v236_v49, 0.0 }
 0x1b9   :  { %v238_v52 = vsel %vm214_vm3, %v237_v51, 0.0 }
 0x1ba   :  { %239 = vadd.xlane.f32.xlu1 %v238_v52 }
 0x22e   :  { %v262_v53 = vpop.xlane.xlu0 %261 }
 0x22f   :  { %379 = vlog2.f32 %v262_v53 }
 0x230   :  { %v223_v54 = vpop.xlane.xlu1 %222 }
 0x231   :  { %381 = vlog2.f32 %v223_v54 }
 0x239   :  { %v380_v55 = vpop.eup %379 }
 0x23a   :  { %v264_v58 = vmul.f32 0.6931472, %v380_v55 }
 0x23b   :  { %v382_v56 = vpop.eup %381 }
 0x23c   :  { %v225_v57 = vmul.f32 0.6931472, %v382_v56  ;;  %v265_v60 = vadd.f32 %v264_v58, %v256_v19 }
 0x23e   :  { %v226_v59 = vadd.f32 %v225_v57, %v217_v20  ;;  %v292_v62 = vsub.f32 %v265_v60, %v508_v18 }
 0x240   :  { %v291_v61 = vsub.f32 %v226_v59, %v508_v18 }
 0x242   :  { %v293_v3 = vadd.f32 %v292_v62, %v291_v61 }
 0x244   :  { %v295_v4 = vsel %vm242_vm4, %v293_v3, 0.0 }
 0x245   :  { %v279_v63 = vpop.xlane.xlu0 %278 }
 0x246   :  { %v281_v0 = vsel %vm242_vm4, %v279_v63, 0.0 }
 0x247   :  { %v240_v1 = vpop.xlane.xlu1 %239  ;;  %282 = vadd.xlane.f32.xlu0 %v281_v0 }
 0x248   :  { %v243_v2 = vsel %vm242_vm4, %v240_v1, 0.0 }
 0x249   :  { %244 = vadd.xlane.f32.xlu1 %v243_v2 }
 0x24d   :  { %296 = vadd.xlane.f32.xlu1 %v295_v4 }
 0x2d4   :  { %v283_v5 = vpop.xlane.xlu0 %282 }
 0x2d5   :  { %v284_v7 = vrot.slane %v283_v5, 4 }
 0x2d6   :  { %v245_v8 = vpop.xlane.xlu1 %244 }
 0x2d7   :  { %v246_v9 = vrot.slane %v245_v8, 4  ;;  %v285_v10 = vadd.f32 %v284_v7, %v283_v5 }
 0x2d9   :  { %v247_v11 = vadd.f32 %v246_v9, %v245_v8  ;;  %v286_v12 = vrot.slane %v285_v10, 2 }
 0x2da   :  { %v297_v13 = vpop.xlane.xlu1 %296 }
 0x2db   :  { %v248_v14 = vrot.slane %v247_v11, 2  ;;  %v287_v15 = vadd.f32 %v286_v12, %v285_v10  ;;  %v298_v16 = vrot.slane %v297_v13, 4 }
 0x2dd   :  { %v299_v17 = vadd.f32 %v298_v16, %v297_v13  ;;  %v249_v18 = vadd.f32 %v248_v14, %v247_v11  ;;  %v288_v19 = vrot.slane %v287_v15, 1 }
 0x2df   :  { %v300_v20 = vrot.slane %v299_v17, 2  ;;  %v250_v21 = vrot.slane %v249_v18, 1  ;;  %v289_v22 = vadd.f32 %v288_v19, %v287_v15 }
 0x2e1   :  { %v301_v23 = vadd.f32 %v300_v20, %v299_v17  ;;  %v251_v24 = vadd.f32 %v250_v21, %v249_v18 }
 0x2e3   :  { %356 = vpush %v251_v24  ;;  %v302_v25 = vrot.slane %v301_v23, 1 }
 0x2e4   :  { %358 = vpush %v289_v22 }
 0x2e5   :  { %v303_v26 = vadd.f32 %v302_v25, %v301_v23 }
 0x2e7   :  { %360 = vpush %v303_v26 }
 0x314   :  { %s357_s1 = spop %356 }
 0x315   :  { %s359_s4 = spop %358 }
 0x316   :  { %s311_s5 = sadd.f32 %s359_s4, %s357_s1 }
 0x318   :  { %s341_s8 = sadd.f32 -11.090355, %s311_s5  ;;  %s361_s9 = spop %360 }
 0x319   :  { %v318_v27 = vstv %s361_s9 }
 0x31a   :  { %v316_v28 = vstv %s341_s8 }
 0x31b   :  { %v317_v29 = vsel %vm315_vm5, %v316_v28, 0.0 }
 0x31c   :  { %v319_v30 = vsel %vm314_vm6, %v318_v27, %v317_v29 }
 0x31d   :  { %320 = vst [vmem:[#allocation7] sm:$0xff] %v319_v30 }
 0x31e   :  { %438 = shalt.err (!%p435_p6)
}
 0x31f   :  { %s439_s13 = scalar_lea.hbm %s540_s2, 128 }
 0x320   :  { %p440_p7 = scmp.ne.s32.totalorder %s540_s2, %s439_s13  ;;  %p443_p8 = scmp.lt.u32.totalorder %s439_s13, %s540_s2 }
 0x322   :  { %p445_p9 = pnand %p443_p8, %p440_p7 }
 0x324   :  { %448 = shalt.err (!%p445_p9)
}
 0x325   :  { %330 = dma.vmem_to_hbm [thread:$0]  %s328_s7, 128, %s540_s2, [#allocation4]  }
 0x326   :  { %453 = dma.done.wait [#allocation4], 128  }
 0x327   :  { %454 = vsyncadd [#allocation4], 4294967168 }
 0x328   :  { %334 = vsyncpa [#allocation3], 1 }
 0x329   :  { %335 = vsyncpa [#allocation6], 1 }
 0x32a   :  { %336 = vsyncpa [#allocation4], 1 }

// kernel: tpu_custom_call.1
= control target key start
LH: loop header
LB: loop body
LE: loop exit
PB: predicated region body
PF: predicated region fallthrough
CT: control target
= control target key end

     0   :  { %7 = vsyncpa [#allocation3], 0  ;;  %s538_s0 = inlined_call_operand.hbm [shape: f32[8,32], index: 0, kind: input, shape index: {}]   ;;  %s539_s1 = inlined_call_operand.hbm [shape: f32[8,32], index: 1, kind: input, shape index: {}]   ;;  %s540_s2 = inlined_call_operand.hbm [shape: f32[1,8,128], index: 2, kind: output, shape index: {}]  }
   0x1   :  { %8 = vsyncpa [#allocation6], 0 }
   0x2   :  { %9 = vsyncpa [#allocation4], 0  ;;  %s455_s9 = smov [#allocation2]   ;;  %s456_s11 = smov [#allocation5]  }
   0x3   :  { %s16_s10 = sshll.u32 %s455_s9, 4  ;;  %s26_s12 = sshll.u32 %s456_s11, 4  ;;  %s17_s10 = int_to_ptr.vmem [resolvable:$true] %s16_s10  ;;  %s27_s12 = int_to_ptr.vmem [resolvable:$true] %s26_s12 }
   0x4   :  { %s383_s15 = scalar_lea.hbm %s538_s0, 128 }
   0x5   :  { %p384_p0 = scmp.ne.s32.totalorder %s538_s0, %s383_s15  ;;  %p387_p1 = scmp.lt.u32.totalorder %s383_s15, %s538_s0 }
   0x7   :  { %p389_p2 = pnand %p387_p1, %p384_p0 }
   0x9   :  { %392 = shalt.err (!%p389_p2)
}
   0xa   :  { %s393_s20 = scalar_lea.vmem %s17_s10, 128  ;;  %p398_p4 = scmp.lt.s32.totalorder %s17_s10, %s17_s10 }
   0xb   :  { %p394_p3 = scmp.ne.s32.totalorder %s17_s10, %s393_s20  ;;  %p399_p5 = scmp.lt.s32.totalorder %s393_s20, %s393_s20 }
   0xd   :  { %p400_p6 = por %p399_p5, %p398_p4 }
   0xf   :  { %p401_p7 = pnand %p400_p6, %p394_p3 }
  0x11   :  { %404 = shalt.err (!%p401_p7)
}
  0x12   :  { %19 = dma.hbm_to_vmem [thread:$0]  %s538_s0, 128, %s17_s10, [#allocation3]  }
  0x13   :  { %s405_s25 = scalar_lea.hbm %s539_s1, 128 }
  0x14   :  { %p406_p8 = scmp.ne.s32.totalorder %s539_s1, %s405_s25  ;;  %p409_p9 = scmp.lt.u32.totalorder %s405_s25, %s539_s1 }
  0x16   :  { %p411_p10 = pnand %p409_p9, %p406_p8 }
  0x18   :  { %414 = shalt.err (!%p411_p10)
}
  0x19   :  { %s415_s30 = scalar_lea.vmem %s27_s12, 128  ;;  %p420_p12 = scmp.lt.s32.totalorder %s27_s12, %s27_s12 }
  0x1a   :  { %p416_p11 = scmp.ne.s32.totalorder %s27_s12, %s415_s30  ;;  %p421_p13 = scmp.lt.s32.totalorder %s415_s30, %s415_s30 }
  0x1c   :  { %p422_p0 = por %p421_p13, %p420_p12 }
  0x1e   :  { %p423_p1 = pnand %p422_p0, %p416_p11 }
  0x20   :  { %426 = shalt.err (!%p423_p1)
}
  0x21   :  { %29 = dma.hbm_to_vmem [thread:$0]  %s539_s1, 128, %s27_s12, [#allocation6]  }
  0x22   :  { %449 = dma.done.wait [#allocation3], 128  }
  0x23   :  { %450 = vsyncadd [#allocation3], 4294967168 }
  0x24   :  { %451 = dma.done.wait [#allocation6], 128  }
  0x25   :  { %452 = vsyncadd [#allocation6], 4294967168  ;;  %v457_v0 = vmov 0.0   ;;  %vm458_vm0 = vmmov 0   ;;  %vm42_vm1 = vcmask 261120   ;;  %v41_v1 = vld [vmem:[#allocation5] sm:$0xff]  ;;  %v203_v5 = vlaneseq }
  0x26   :  { %346 = vmatprep.subr.mxu0 %v457_v0  ;;  %351 = vmatprep.subr.mxu1 %v457_v0  ;;  %v120_v2 = vld [vmem:[#allocation2] sm:$0xff]  ;;  %vm214_vm3 = vcmask 64512   ;;  %vm242_vm4 = vcmask 7168   ;;  %s459_s6 = smov [#allocation7]  }
  0x27   :  { %348 = vmatprep.mubr.msk.f32.mxu0 %vm458_vm0, %v457_v0  ;;  %353 = vmatprep.mubr.msk.f32.mxu1 %vm458_vm0, %v457_v0  ;;  %v198_v3 = vmul.f32 %v120_v2, %v41_v1  ;;  %v499_v6 = vand.u32 127, %v203_v5  ;;  %s327_s7 = sshll.u32 %s459_s6, 4  ;;  %s328_s7 = int_to_ptr.vmem [resolvable:$true] %s327_s7 }
  0x28   :  { %347 = vmatpush3.xpose.msk.msra.mxu0 %vm42_vm1, %v41_v1  ;;  %352 = vmatpush3.xpose.msk.msra.mxu1 %vm42_vm1, %v120_v2  ;;  %s427_s10 = scalar_lea.vmem %s328_s7, 128  ;;  %p432_p3 = scmp.lt.s32.totalorder %s328_s7, %s328_s7 }
  0x29   :  { %v199_v4 = vsel %vm42_vm1, %v198_v3, 0.0  ;;  %vm209_vm2 = vcmp.lt.s32.totalorder %v499_v6, 8  ;;  %vm315_vm5 = vcmp.eq.s32.totalorder %v499_v6, 1  ;;  %vm314_vm6 = vcmp.eq.s32.totalorder %v499_v6, 0  ;;  %p428_p2 = scmp.ne.s32.totalorder %s328_s7, %s427_s10  ;;  %p433_p4 = scmp.lt.s32.totalorder %s427_s10, %s427_s10 }
  0x2a   :  { %200 = vadd.xlane.f32.xlu0 %v199_v4 }
  0x2b   :  { %349 = vmatmul.mubr.msk.f32.vlgmr.msra.gmra.mrb[0].mxu0 %vm42_vm1, %v120_v2  ;;  %354 = vmatmul.mubr.msk.f32.vlgmr.msra.gmra.mrb[0].mxu1 %vm42_vm1, %v41_v1  ;;  %p434_p5 = por %p433_p4, %p432_p3 }
  0x2d   :  { %p435_p6 = pnand %p434_p5, %p428_p2 }
  0xb7   :  { %v201_v17 = vpop.xlane.xlu0 %200 }
  0xb8   :  { %v508_v18 = vmul.f32 2.0, %v201_v17 }
  0xfe   :  { %v115_v7 = vpop.f32.mrb[0].mxu0  ;;  %v193_v8 = vpop.f32.mrb[0].mxu1 }
  0xff   :  { %v119_v9 = vmul.f32 2.0, %v115_v7  ;;  %v197_v10 = vmul.f32 2.0, %v193_v8  ;;  %v355_v11 = vpop.f32.mrb[1].mxu1  ;;  %v350_v12 = vpop.f32.mrb[1].mxu0 }
 0x101   :  { %v253_v13 = vsel %vm209_vm2, %v197_v10, -1e+30  ;;  %v213_v14 = vsel %vm209_vm2, %v119_v9, -1e+30 }
 0x102   :  { %v254_v15 = vsel %vm214_vm3, %v253_v13, -inf  ;;  %v215_v16 = vsel %vm214_vm3, %v213_v14, -inf }
 0x103   :  { %255 = vmax.xlane.f32.xlu1 %v254_v15  ;;  %216 = vmax.xlane.f32.xlu0 %v215_v16 }
 0x190   :  { %v256_v19 = vpop.xlane.xlu1 %255  ;;  %v217_v20 = vpop.xlane.xlu0 %216 }
 0x191   :  { %v257_v21 = vsub.f32 %v253_v13, %v256_v19  ;;  %v267_v22 = vsub.f32 %v508_v18, %v256_v19  ;;  %v218_v23 = vsub.f32 %v213_v14, %v217_v20  ;;  %v228_v24 = vsub.f32 %v508_v18, %v217_v20 }
 0x192   :  { %v266_v38 = vsub.f32 %v256_v19, %v508_v18  ;;  %v227_v41 = vsub.f32 %v217_v20, %v508_v18 }
 0x193   :  { %v258_v25 = vmul.f32 1.442695, %v257_v21  ;;  %v268_v26 = vmul.f32 1.442695, %v267_v22  ;;  %v219_v27 = vmul.f32 1.442695, %v218_v23 }
 0x194   :  { %v229_v28 = vmul.f32 1.442695, %v228_v24 }
 0x195   :  { %367 = vpow2.f32 %v258_v25 }
 0x196   :  { %369 = vpow2.f32 %v268_v26 }
 0x197   :  { %371 = vpow2.f32 %v219_v27 }
 0x198   :  { %373 = vpow2.f32 %v229_v28 }
 0x19f   :  { %v368_v29 = vpop.eup %367 }
 0x1a0   :  { %v370_v30 = vpop.eup %369  ;;  %v260_v31 = vsel %vm214_vm3, %v368_v29, 0.0 }
 0x1a1   :  { %v372_v32 = vpop.eup %371  ;;  %261 = vadd.xlane.f32.xlu0 %v260_v31  ;;  %v270_v33 = vadd.f32 %v370_v30, %v368_v29 }
 0x1a2   :  { %v374_v34 = vpop.eup %373  ;;  %v221_v35 = vsel %vm214_vm3, %v372_v32, 0.0 }
 0x1a3   :  { %222 = vadd.xlane.f32.xlu1 %v221_v35  ;;  %375 = vlog2.f32 %v270_v33  ;;  %v231_v36 = vadd.f32 %v374_v34, %v372_v32 }
 0x1a5   :  { %377 = vlog2.f32 %v231_v36 }
 0x1ad   :  { %v376_v37 = vpop.eup %375 }
 0x1ae   :  { %v272_v39 = vmul.f32 0.6931472, %v376_v37 }
 0x1af   :  { %v378_v40 = vpop.eup %377 }
 0x1b0   :  { %v273_v42 = vadd.f32 %v272_v39, %v266_v38  ;;  %v233_v43 = vmul.f32 0.6931472, %v378_v40 }
 0x1b2   :  { %v274_v44 = vmax.f32 %v273_v42, 0.0  ;;  %v234_v45 = vadd.f32 %v233_v43, %v227_v41 }
 0x1b4   :  { %v275_v46 = vmin.f32 %v274_v44, 100.0  ;;  %v235_v47 = vmax.f32 %v234_v45, 0.0 }
 0x1b6   :  { %v276_v48 = vsel %vm209_vm2, %v275_v46, 0.0  ;;  %v236_v49 = vmin.f32 %v235_v47, 100.0 }
 0x1b7   :  { %v277_v50 = vsel %vm214_vm3, %v276_v48, 0.0 }
 0x1b8   :  { %278 = vadd.xlane.f32.xlu0 %v277_v50  ;;  %v237_v51 = vsel %vm209_vm2, %v236_v49, 0.0 }
 0x1b9   :  { %v238_v52 = vsel %vm214_vm3, %v237_v51, 0.0 }
 0x1ba   :  { %239 = vadd.xlane.f32.xlu1 %v238_v52 }
 0x22e   :  { %v262_v53 = vpop.xlane.xlu0 %261 }
 0x22f   :  { %379 = vlog2.f32 %v262_v53 }
 0x230   :  { %v223_v54 = vpop.xlane.xlu1 %222 }
 0x231   :  { %381 = vlog2.f32 %v223_v54 }
 0x239   :  { %v380_v55 = vpop.eup %379 }
 0x23a   :  { %v264_v58 = vmul.f32 0.6931472, %v380_v55 }
 0x23b   :  { %v382_v56 = vpop.eup %381 }
 0x23c   :  { %v225_v57 = vmul.f32 0.6931472, %v382_v56  ;;  %v265_v60 = vadd.f32 %v264_v58, %v256_v19 }
 0x23e   :  { %v226_v59 = vadd.f32 %v225_v57, %v217_v20  ;;  %v292_v62 = vsub.f32 %v265_v60, %v508_v18 }
 0x240   :  { %v291_v61 = vsub.f32 %v226_v59, %v508_v18 }
 0x242   :  { %v293_v3 = vadd.f32 %v292_v62, %v291_v61 }
 0x244   :  { %v295_v4 = vsel %vm242_vm4, %v293_v3, 0.0 }
 0x245   :  { %v279_v63 = vpop.xlane.xlu0 %278 }
 0x246   :  { %v281_v0 = vsel %vm242_vm4, %v279_v63, 0.0 }
 0x247   :  { %v240_v1 = vpop.xlane.xlu1 %239  ;;  %282 = vadd.xlane.f32.xlu0 %v281_v0 }
 0x248   :  { %v243_v2 = vsel %vm242_vm4, %v240_v1, 0.0 }
 0x249   :  { %244 = vadd.xlane.f32.xlu1 %v243_v2 }
 0x24d   :  { %296 = vadd.xlane.f32.xlu1 %v295_v4 }
 0x2d4   :  { %v283_v5 = vpop.xlane.xlu0 %282 }
 0x2d5   :  { %v284_v7 = vrot.slane %v283_v5, 4 }
 0x2d6   :  { %v245_v8 = vpop.xlane.xlu1 %244 }
 0x2d7   :  { %v246_v9 = vrot.slane %v245_v8, 4  ;;  %v285_v10 = vadd.f32 %v284_v7, %v283_v5 }
 0x2d9   :  { %v247_v11 = vadd.f32 %v246_v9, %v245_v8  ;;  %v286_v12 = vrot.slane %v285_v10, 2 }
 0x2da   :  { %v297_v13 = vpop.xlane.xlu1 %296 }
 0x2db   :  { %v248_v14 = vrot.slane %v247_v11, 2  ;;  %v287_v15 = vadd.f32 %v286_v12, %v285_v10  ;;  %v298_v16 = vrot.slane %v297_v13, 4 }
 0x2dd   :  { %v299_v17 = vadd.f32 %v298_v16, %v297_v13  ;;  %v249_v18 = vadd.f32 %v248_v14, %v247_v11  ;;  %v288_v19 = vrot.slane %v287_v15, 1 }
 0x2df   :  { %v300_v20 = vrot.slane %v299_v17, 2  ;;  %v250_v21 = vrot.slane %v249_v18, 1  ;;  %v289_v22 = vadd.f32 %v288_v19, %v287_v15 }
 0x2e1   :  { %v301_v23 = vadd.f32 %v300_v20, %v299_v17  ;;  %v251_v24 = vadd.f32 %v250_v21, %v249_v18 }
 0x2e3   :  { %356 = vpush %v251_v24  ;;  %v302_v25 = vrot.slane %v301_v23, 1 }
 0x2e4   :  { %358 = vpush %v289_v22 }
 0x2e5   :  { %v303_v26 = vadd.f32 %v302_v25, %v301_v23 }
 0x2e7   :  { %360 = vpush %v303_v26 }
 0x314   :  { %s357_s1 = spop %356 }
 0x315   :  { %s359_s4 = spop %358 }
 0x316   :  { %s311_s5 = sadd.f32 %s359_s4, %s357_s1 }
 0x318   :  { %s341_s8 = sadd.f32 -11.090355, %s311_s5  ;;  %s361_s9 = spop %360 }
 0x319   :  { %v318_v27 = vstv %s361_s9 }
 0x31a   :  { %v316_v28 = vstv %s341_s8 }
 0x31b   :  { %v317_v29 = vsel %vm315_vm5, %v316_v28, 0.0 }
 0x31c   :  { %v319_v30 = vsel %vm314_vm6, %v318_v27, %v317_v29 }
 0x31d   :  { %320 = vst [vmem:[#allocation7] sm:$0xff] %v319_v30 }
 0x31e   :  { %438 = shalt.err (!%p435_p6)
}
 0x31f   :  { %s439_s13 = scalar_lea.hbm %s540_s2, 128 }
 0x320   :  { %p440_p7 = scmp.ne.s32.totalorder %s540_s2, %s439_s13  ;;  %p443_p8 = scmp.lt.u32.totalorder %s439_s13, %s540_s2 }
 0x322   :  { %p445_p9 = pnand %p443_p8, %p440_p7 }
 0x324   :  { %448 = shalt.err (!%p445_p9)
}
 0x325   :  { %330 = dma.vmem_to_hbm [thread:$0]  %s328_s7, 128, %s540_s2, [#allocation4]  }
 0x326   :  { %453 = dma.done.wait [#allocation4], 128  }
 0x327   :  { %454 = vsyncadd [#allocation4], 4294967168 }
 0x328   :  { %334 = vsyncpa [#allocation3], 1 }
 0x329   :  { %335 = vsyncpa [#allocation6], 1 }
 0x32a   :  { %336 = vsyncpa [#allocation4], 1 }

</bundles_post_ra>
